<compile_context>
chip_gen: v7x
topology: tpu7x:2x2x1
jax: 0.10.0
libtpu: 0.0.40
codegen_flags: <defaults>
</compile_context>

<pallas_src>
import functools

import jax
import jax.numpy as jnp
from jax.experimental import pallas as pl
from jax.experimental.pallas import tpu as pltpu


def _round_up(n, m):
    return ((n + m - 1) // m) * m


# ---------------------------------------------------------------------------
# Kernels
# ---------------------------------------------------------------------------
def _trunk_tile(x, w1, b1, w2, b2, w3, b3, last_relu):
    """Pointwise MLP 3->64->128->1024 on one (TN, 3) tile (BN already folded)."""
    h = jnp.maximum(jnp.dot(x, w1, preferred_element_type=jnp.float32) + b1, 0.0)
    h = jnp.maximum(jnp.dot(h, w2, preferred_element_type=jnp.float32) + b2, 0.0)
    h = jnp.dot(h, w3, preferred_element_type=jnp.float32) + b3
    return jnp.maximum(h, 0.0) if last_relu else h


def _masked_running_max(o_ref, h, k, n_points, block_n):
    """Fold one (TN, 1024) tile into the resident running max in o_ref."""
    if n_points % block_n != 0:
        # Ragged last tile: mask padded rows with -inf before the max.
        row = jax.lax.broadcasted_iota(jnp.int32, (block_n, 1), 0)
        h = jnp.where(row + k * block_n < n_points, h, -jnp.inf)
    o_ref[...] = jnp.maximum(o_ref[...], jnp.max(h, axis=0, keepdims=True))


def _mlp_max_kernel(x_ref, w1, b1, w2, b2, w3, b3, o_ref, *,
                    last_relu, n_points, block_n):
    """Per (batch, point-tile): pointwise MLP then running max over points."""
    k = pl.program_id(1)

    @pl.when(k == 0)
    def _():
        o_ref[...] = jnp.full(o_ref.shape, -jnp.inf, o_ref.dtype)

    h = _trunk_tile(x_ref[...], w1[...], b1[...], w2[...], b2[...],
                    w3[...], b3[...], last_relu)
    _masked_running_max(o_ref, h, k, n_points, block_n)


def _transform_mlp_max_kernel(x_ref, t_ref, w1, b1, w2, b2, w3, b3, o_ref, *,
                              last_relu, n_points, block_n):
    """Same as above, with the 3x3 transform folded into the first layer."""
    k = pl.program_id(1)

    @pl.when(k == 0)
    def _():
        o_ref[...] = jnp.full(o_ref.shape, -jnp.inf, o_ref.dtype)

    # x @ trans @ W1  ==  x @ (trans @ W1): fold the tiny (3,3)@(3,64) first.
    w1p = jnp.dot(t_ref[...], w1[...], preferred_element_type=jnp.float32)
    h = _trunk_tile(x_ref[...], w1p, b1[...], w2[...], b2[...],
                    w3[...], b3[...], last_relu)
    _masked_running_max(o_ref, h, k, n_points, block_n)


def _stn_head_kernel(feat_ref, wf1, bf1, wf2, bf2, wf3, bf3, iden_ref, o_ref):
    """STN3d fully-connected head: 1024->512->256->9 (+ identity, passed in)."""
    h = jnp.maximum(jnp.dot(feat_ref[...], wf1[...],
                            preferred_element_type=jnp.float32) + bf1[...], 0.0)
    h = jnp.maximum(jnp.dot(h, wf2[...],
                            preferred_element_type=jnp.float32) + bf2[...], 0.0)
    h = jnp.dot(h, wf3[...], preferred_element_type=jnp.float32) + bf3[...]
    o_ref[...] = h + iden_ref[...]


# ---------------------------------------------------------------------------
# pallas_call wrappers
# ---------------------------------------------------------------------------
def _pointwise_mlp_max(x, conv_params, *, last_relu, trans=None, block_n=512):
    """x: (B, N, 3) [+ optional trans (B, 3, 3)] -> (B, 1024) max-pooled feature."""
    B, N, _ = x.shape
    w1, b1, w2, b2, w3, b3 = conv_params
    cout = w3.shape[1]

    # Point tile: largest of (block_n, N rounded to a sublane multiple of 8).
    tn = _round_up(min(block_n, _round_up(N, 8)), 8)
    n_pad = _round_up(N, tn)
    if n_pad != N:
        x = jnp.pad(x, ((0, 0), (0, n_pad - N), (0, 0)))
    num_k = n_pad // tn

    const = lambda a: pl.BlockSpec(a.shape, lambda b, k: (0, 0))
    in_specs = [pl.BlockSpec((None, tn, 3), lambda b, k: (b, k, 0))]
    args = [x]
    if trans is None:
        kernel = functools.partial(_mlp_max_kernel, last_relu=last_relu,
                                   n_points=N, block_n=tn)
    else:
        in_specs.append(pl.BlockSpec((None, 3, 3), lambda b, k: (b, 0, 0)))
        args.append(trans)
        kernel = functools.partial(_transform_mlp_max_kernel, last_relu=last_relu,
                                   n_points=N, block_n=tn)
    in_specs += [const(w1), const(b1), const(w2), const(b2), const(w3), const(b3)]
    args += [w1, b1, w2, b2, w3, b3]

    out = pl.pallas_call(
        kernel,
        out_shape=jax.ShapeDtypeStruct((B, 1, cout), jnp.float32),
        grid=(B, num_k),
        in_specs=in_specs,
        # Same output block across the point-tile axis -> resident accumulator.
        out_specs=pl.BlockSpec((None, 1, cout), lambda b, k: (b, 0, 0)),
        compiler_params=pltpu.CompilerParams(
            dimension_semantics=("parallel", "arbitrary"),
            vmem_limit_bytes=32 * 1024 * 1024,
        ),
    )(*args)
    return out[:, 0, :]


def stn_head(feat, fc_params):
    """feat: (B, 1024) -> (B, 9). Tiny; single whole-array Pallas call."""
    B = feat.shape[0]
    wf1, bf1, wf2, bf2, wf3, bf3 = fc_params
    iden = jnp.array([[1., 0., 0., 0., 1., 0., 0., 0., 1.]], jnp.float32)
    return pl.pallas_call(
        _stn_head_kernel,
        out_shape=jax.ShapeDtypeStruct((B, 9), jnp.float32),
    )(feat, wf1, bf1, wf2, bf2, wf3, bf3, iden)


# ---------------------------------------------------------------------------
# Parameter construction (deterministic, synthetic; BN folded, inference mode)
# ---------------------------------------------------------------------------
def _fold_bn(w, b, gamma, beta, mean, var, eps=1e-5):
    s = gamma / jnp.sqrt(var + eps)
    return w * s[None, :], (b - mean) * s + beta


def _linear_bn(key, cin, cout, with_bn=True):
    kw, kb, kg, kbe, km, kv = jax.random.split(key, 6)
    w = 0.1 * jax.random.normal(kw, (cin, cout), jnp.float32)
    b = 0.1 * jax.random.normal(kb, (cout,), jnp.float32)
    if with_bn:
        gamma = 1.0 + 0.1 * jax.random.normal(kg, (cout,), jnp.float32)
        beta = 0.1 * jax.random.normal(kbe, (cout,), jnp.float32)
        mean = 0.1 * jax.random.normal(km, (cout,), jnp.float32)
        var = 1.0 + 0.1 * jnp.abs(jax.random.normal(kv, (cout,), jnp.float32))
        w, b = _fold_bn(w, b, gamma, beta, mean, var)
    return w, b.reshape(1, cout)


def make_params(key):
    keys = jax.random.split(key, 12)
    # STN3d conv trunk (conv+bn folded)
    sc1 = _linear_bn(keys[0], 3, 64)
    sc2 = _linear_bn(keys[1], 64, 128)
    sc3 = _linear_bn(keys[2], 128, 1024)
    # STN3d fc head (fc1/fc2 have BN, fc3 does not)
    sf1 = _linear_bn(keys[3], 1024, 512)
    sf2 = _linear_bn(keys[4], 512, 256)
    sf3 = _linear_bn(keys[5], 256, 9, with_bn=False)
    # PointFeat main conv trunk (conv+bn folded; conv3 has BN but NO relu)
    mc1 = _linear_bn(keys[6], 3, 64)
    mc2 = _linear_bn(keys[7], 64, 128)
    mc3 = _linear_bn(keys[8], 128, 1024)
    return {
        "stn_conv": (*sc1, *sc2, *sc3),
        "stn_fc": (*sf1, *sf2, *sf3),
        "main_conv": (*mc1, *mc2, *mc3),
    }


# ---------------------------------------------------------------------------
# Full forward (global_feat=True)
# ---------------------------------------------------------------------------
def point_feat_forward(x_bcn, params, *, block_n=512):
    """x_bcn: (B, 3, N) — PyTorch Conv1d layout.

    Returns (global_feat (B, 1024), trans (B, 3, 3)).
    """
    B = x_bcn.shape[0]
    x = jnp.transpose(x_bcn, (0, 2, 1))                                 # (B, N, 3)
    # STN3d: trunk + max pool, then tiny fc head.
    stn_feat = _pointwise_mlp_max(x, params["stn_conv"], last_relu=True,
                                  block_n=block_n)                      # (B, 1024)
    trans = stn_head(stn_feat, params["stn_fc"]).reshape(B, 3, 3)       # (B, 3, 3)
    # Main trunk: bmm with trans folded into W1; conv3+bn3 has no relu.
    gfeat = _pointwise_mlp_max(x, params["main_conv"], last_relu=False,
                               trans=trans, block_n=block_n)            # (B, 1024)
    return gfeat, trans


# ---------------------------------------------------------------------------
# Pure-JAX reference (same folded params, same op ordering / precision)
# ---------------------------------------------------------------------------
def ref_forward(x_bcn, p):
    x = jnp.transpose(x_bcn, (0, 2, 1))

    def pw(h, w, b, relu=True):
        h = jnp.einsum("bnc,cd->bnd", h, w) + b
        return jnp.maximum(h, 0.0) if relu else h

    w1, b1, w2, b2, w3, b3 = p["stn_conv"]
    feat = jnp.max(pw(pw(pw(x, w1, b1), w2, b2), w3, b3), axis=1)
    wf1, bf1, wf2, bf2, wf3, bf3 = p["stn_fc"]
    g = jnp.maximum(feat @ wf1 + bf1, 0.0)
    g = jnp.maximum(g @ wf2 + bf2, 0.0)
    g = g @ wf3 + bf3
    iden = jnp.array([1, 0, 0, 0, 1, 0, 0, 0, 1], jnp.float32)
    trans = (g + iden).reshape(-1, 3, 3)
    m1, mb1, m2, mb2, m3, mb3 = p["main_conv"]
    # Same fold order as the kernel: x @ (trans @ W1).
    w1p = jnp.einsum("bcd,de->bce", trans, m1)
    h = jnp.maximum(jnp.einsum("bnc,bce->bne", x, w1p) + mb1, 0.0)
    h = pw(pw(h, m2, mb2), m3, mb3, relu=False)
    return jnp.max(h, axis=1), trans


if __name__ == "__main__":
    key = jax.random.PRNGKey(0)
    kx, kp = jax.random.split(key)
    B, C, N = 2, 3, 20                       # (batch, xyz channels, points)
    x = jax.random.normal(kx, (B, C, N), jnp.float32)
    params = make_params(kp)

    # block_n=8 at N=20 exercises the tiled running-max path, including a
    # ragged last tile (mask with -inf).  Use the default block_n=512 for
    # realistic point counts.
    gfeat, trans = jax.block_until_ready(
        point_feat_forward(x, params, block_n=8))
    gref, tref = ref_forward(x, params)

    assert gfeat.shape == (B, 1024) and trans.shape == (B, 3, 3)
    assert bool(jnp.all(jnp.isfinite(gfeat))) and bool(jnp.all(jnp.isfinite(trans)))
    assert jnp.allclose(trans, tref, rtol=1e-2, atol=1e-2), \
        float(jnp.max(jnp.abs(trans - tref)))
    assert jnp.allclose(gfeat, gref, rtol=1e-2, atol=1e-2), \
        float(jnp.max(jnp.abs(gfeat - gref)))
    print("KERNEL_OK")
</pallas_src>

<mosaic_0001>
module attributes {stable_mosaic.version = 11 : i64} {
  func.func @_mlp_max_kernel(%arg0: i32, %arg1: i32, %arg2: memref<1x8x3xf32, #tpu.memory_space<vmem>>, %arg3: memref<3x64xf32, #tpu.memory_space<vmem>>, %arg4: memref<1x64xf32, #tpu.memory_space<vmem>>, %arg5: memref<64x128xf32, #tpu.memory_space<vmem>>, %arg6: memref<1x128xf32, #tpu.memory_space<vmem>>, %arg7: memref<128x1024xf32, #tpu.memory_space<vmem>>, %arg8: memref<1x1024xf32, #tpu.memory_space<vmem>>, %arg9: memref<1x1x1024xf32, #tpu.memory_space<vmem>>) attributes {dimension_semantics = [#tpu.dimension_semantics<parallel>, #tpu.dimension_semantics<arbitrary>], iteration_bounds = array<i64: 2, 3>, scalar_prefetch = 0 : i64, scratch_operands = 0 : i64, tpu.core_type = #tpu.core_type<tc>, window_params = [{transform_indices = @transform_0, window_bounds = array<i64: 1, 8, 3>}, {pipeline_mode = #tpu.pipeline_mode<synchronous>, transform_indices = @transform_1, window_bounds = array<i64: 3, 64>}, {pipeline_mode = #tpu.pipeline_mode<synchronous>, transform_indices = @transform_2, window_bounds = array<i64: 1, 64>}, {pipeline_mode = #tpu.pipeline_mode<synchronous>, transform_indices = @transform_3, window_bounds = array<i64: 64, 128>}, {pipeline_mode = #tpu.pipeline_mode<synchronous>, transform_indices = @transform_4, window_bounds = array<i64: 1, 128>}, {pipeline_mode = #tpu.pipeline_mode<synchronous>, transform_indices = @transform_5, window_bounds = array<i64: 128, 1024>}, {pipeline_mode = #tpu.pipeline_mode<synchronous>, transform_indices = @transform_6, window_bounds = array<i64: 1, 1024>}, {transform_indices = @transform_7, window_bounds = array<i64: 1, 1, 1024>}]} {
    %c0_i32 = arith.constant 0 : i32
    %0 = arith.cmpi eq, %arg1, %c0_i32 : i32
    %1 = arith.extui %0 : i1 to i32
    %c0_i32_0 = arith.constant 0 : i32
    %2 = arith.cmpi ne, %1, %c0_i32_0 : i32
    scf.if %2 {
      %cst_28 = arith.constant 0xFF800000 : f32
      %44 = vector.broadcast %cst_28 : f32 to vector<1x1024xf32>
      %c0_29 = arith.constant 0 : index
      %c0_30 = arith.constant 0 : index
      %c0_31 = arith.constant 0 : index
      %45 = vector.load %arg9[%c0_29, %c0_30, %c0_31] : memref<1x1x1024xf32, #tpu.memory_space<vmem>>, vector<1x1x1024xf32>
      %46 = vector.shape_cast %45 : vector<1x1x1024xf32> to vector<1x1024xf32>
      %47 = vector.shape_cast %44 : vector<1x1024xf32> to vector<1x1x1024xf32>
      tpu.vector_store %arg9[%c0_29, %c0_30, %c0_31], %47 {strides = array<i32>} : memref<1x1x1024xf32, #tpu.memory_space<vmem>>, vector<1x1x1024xf32>,
    } else {
    }
    %c0 = arith.constant 0 : index
    %c0_1 = arith.constant 0 : index
    %c0_2 = arith.constant 0 : index
    %3 = vector.load %arg2[%c0, %c0_1, %c0_2] : memref<1x8x3xf32, #tpu.memory_space<vmem>>, vector<1x8x3xf32>
    %4 = vector.shape_cast %3 : vector<1x8x3xf32> to vector<8x3xf32>
    %c0_3 = arith.constant 0 : index
    %c0_4 = arith.constant 0 : index
    %5 = vector.load %arg3[%c0_3, %c0_4] : memref<3x64xf32, #tpu.memory_space<vmem>>, vector<3x64xf32>
    %c0_5 = arith.constant 0 : index
    %c0_6 = arith.constant 0 : index
    %6 = vector.load %arg4[%c0_5, %c0_6] : memref<1x64xf32, #tpu.memory_space<vmem>>, vector<1x64xf32>
    %c0_7 = arith.constant 0 : index
    %c0_8 = arith.constant 0 : index
    %7 = vector.load %arg5[%c0_7, %c0_8] : memref<64x128xf32, #tpu.memory_space<vmem>>, vector<64x128xf32>
    %c0_9 = arith.constant 0 : index
    %c0_10 = arith.constant 0 : index
    %8 = vector.load %arg6[%c0_9, %c0_10] : memref<1x128xf32, #tpu.memory_space<vmem>>, vector<1x128xf32>
    %c0_11 = arith.constant 0 : index
    %c0_12 = arith.constant 0 : index
    %9 = vector.load %arg7[%c0_11, %c0_12] : memref<128x1024xf32, #tpu.memory_space<vmem>>, vector<128x1024xf32>
    %c0_13 = arith.constant 0 : index
    %c0_14 = arith.constant 0 : index
    %10 = vector.load %arg8[%c0_13, %c0_14] : memref<1x1024xf32, #tpu.memory_space<vmem>>, vector<1x1024xf32>
    %cst = arith.constant dense<0.000000e+00> : vector<8x64xf32>
    %11 = tpu.matmul %4, %5, %cst {dimension_numbers = #tpu.dot_dimension_numbers<[1], [0], [0], [1], [0, 0, 1, 1], [], []>} : vector<8x3xf32>, vector<3x64xf32>, vector<8x64xf32> -> vector<8x64xf32>
    %12 = vector.broadcast %6 : vector<1x64xf32> to vector<8x64xf32>
    %13 = arith.addf %11, %12 : vector<8x64xf32>
    %cst_15 = arith.constant 0.000000e+00 : f32
    %14 = vector.broadcast %cst_15 : f32 to vector<8x64xf32>
    %15 = arith.maximumf %13, %14 : vector<8x64xf32>
    %cst_16 = arith.constant dense<0.000000e+00> : vector<8x128xf32>
    %16 = tpu.matmul %15, %7, %cst_16 {dimension_numbers = #tpu.dot_dimension_numbers<[1], [0], [0], [1], [0, 0, 1, 1], [], []>} : vector<8x64xf32>, vector<64x128xf32>, vector<8x128xf32> -> vector<8x128xf32>
    %17 = vector.broadcast %8 : vector<1x128xf32> to vector<8x128xf32>
    %18 = arith.addf %16, %17 : vector<8x128xf32>
    %cst_17 = arith.constant 0.000000e+00 : f32
    %19 = vector.broadcast %cst_17 : f32 to vector<8x128xf32>
    %20 = arith.maximumf %18, %19 : vector<8x128xf32>
    %cst_18 = arith.constant dense<0.000000e+00> : vector<8x1024xf32>
    %21 = tpu.matmul %20, %9, %cst_18 {dimension_numbers = #tpu.dot_dimension_numbers<[1], [0], [0], [1], [0, 0, 1, 1], [], []>} : vector<8x128xf32>, vector<128x1024xf32>, vector<8x1024xf32> -> vector<8x1024xf32>
    %22 = vector.broadcast %10 : vector<1x1024xf32> to vector<8x1024xf32>
    %23 = arith.addf %21, %22 : vector<8x1024xf32>
    %cst_19 = arith.constant 0.000000e+00 : f32
    %24 = vector.broadcast %cst_19 : f32 to vector<8x1024xf32>
    %25 = arith.maximumf %23, %24 : vector<8x1024xf32>
    %26 = tpu.iota {dimensions = array<i32: 0>} : vector<8x1xi32>
    %c8_i32 = arith.constant 8 : i32
    %27 = arith.muli %arg1, %c8_i32 : i32
    %28 = vector.broadcast %27 : i32 to vector<8x1xi32>
    %29 = arith.addi %26, %28 : vector<8x1xi32>
    %c20_i32 = arith.constant 20 : i32
    %30 = vector.broadcast %c20_i32 : i32 to vector<8x1xi32>
    %31 = arith.cmpi slt, %29, %30 : vector<8x1xi32>
    %cst_20 = arith.constant 0xFF800000 : f32
    %32 = vector.shape_cast %31 : vector<8x1xi1> to vector<8x1xi1>
    %33 = vector.broadcast %32 : vector<8x1xi1> to vector<8x1024xi1>
    %34 = vector.broadcast %cst_20 : f32 to vector<8x1024xf32>
    %35 = arith.select %33, %25, %34 : vector<8x1024xi1>, vector<8x1024xf32>
    %c0_21 = arith.constant 0 : index
    %c0_22 = arith.constant 0 : index
    %c0_23 = arith.constant 0 : index
    %36 = vector.load %arg9[%c0_21, %c0_22, %c0_23] : memref<1x1x1024xf32, #tpu.memory_space<vmem>>, vector<1x1x1024xf32>
    %37 = vector.shape_cast %36 : vector<1x1x1024xf32> to vector<1x1024xf32>
    %cst_24 = arith.constant dense<0xFF800000> : vector<1024xf32>
    %38 = vector.multi_reduction <maximumf>, %35, %cst_24 [0] : vector<8x1024xf32> to vector<1024xf32>
    %39 = vector.shape_cast %38 : vector<1024xf32> to vector<1x1024xf32>
    %40 = arith.maximumf %37, %39 : vector<1x1024xf32>
    %c0_25 = arith.constant 0 : index
    %c0_26 = arith.constant 0 : index
    %c0_27 = arith.constant 0 : index
    %41 = vector.load %arg9[%c0_25, %c0_26, %c0_27] : memref<1x1x1024xf32, #tpu.memory_space<vmem>>, vector<1x1x1024xf32>
    %42 = vector.shape_cast %41 : vector<1x1x1024xf32> to vector<1x1024xf32>
    %43 = vector.shape_cast %40 : vector<1x1024xf32> to vector<1x1x1024xf32>
    tpu.vector_store %arg9[%c0_25, %c0_26, %c0_27], %43 {strides = array<i32>} : memref<1x1x1024xf32, #tpu.memory_space<vmem>>, vector<1x1x1024xf32>,
    return
  }
  func.func @transform_0(%arg0: i32, %arg1: i32) -> (i32, i32, i32) {
    %c0_i32 = arith.constant 0 : i32
    %c0_i32_0 = arith.constant 0 : i32
    return %arg0, %arg1, %c0_i32 : i32, i32, i32
  }
  func.func @transform_1(%arg0: i32, %arg1: i32) -> (i32, i32) {
    %c0_i32 = arith.constant 0 : i32
    %c0_i32_0 = arith.constant 0 : i32
    %c0_i32_1 = arith.constant 0 : i32
    return %c0_i32, %c0_i32_0 : i32, i32
  }
  func.func @transform_2(%arg0: i32, %arg1: i32) -> (i32, i32) {
    %c0_i32 = arith.constant 0 : i32
    %c0_i32_0 = arith.constant 0 : i32
    %c0_i32_1 = arith.constant 0 : i32
    return %c0_i32, %c0_i32_0 : i32, i32
  }
  func.func @transform_3(%arg0: i32, %arg1: i32) -> (i32, i32) {
    %c0_i32 = arith.constant 0 : i32
    %c0_i32_0 = arith.constant 0 : i32
    %c0_i32_1 = arith.constant 0 : i32
    return %c0_i32, %c0_i32_0 : i32, i32
  }
  func.func @transform_4(%arg0: i32, %arg1: i32) -> (i32, i32) {
    %c0_i32 = arith.constant 0 : i32
    %c0_i32_0 = arith.constant 0 : i32
    %c0_i32_1 = arith.constant 0 : i32
    return %c0_i32, %c0_i32_0 : i32, i32
  }
  func.func @transform_5(%arg0: i32, %arg1: i32) -> (i32, i32) {
    %c0_i32 = arith.constant 0 : i32
    %c0_i32_0 = arith.constant 0 : i32
    %c0_i32_1 = arith.constant 0 : i32
    return %c0_i32, %c0_i32_0 : i32, i32
  }
  func.func @transform_6(%arg0: i32, %arg1: i32) -> (i32, i32) {
    %c0_i32 = arith.constant 0 : i32
    %c0_i32_0 = arith.constant 0 : i32
    %c0_i32_1 = arith.constant 0 : i32
    return %c0_i32, %c0_i32_0 : i32, i32
  }
  func.func @transform_7(%arg0: i32, %arg1: i32) -> (i32, i32, i32) {
    %c0_i32 = arith.constant 0 : i32
    %c0_i32_0 = arith.constant 0 : i32
    %c0_i32_1 = arith.constant 0 : i32
    return %arg0, %c0_i32, %c0_i32_0 : i32, i32, i32
  }
}

</mosaic_0001>

<bundles_post_ra>
// kernel: tpu_custom_call.1
= control target key start
LH: loop header
LB: loop body
LE: loop exit
PB: predicated region body
PF: predicated region fallthrough
CT: control target
= control target key end

     0   :  { %12 = vsyncpa [#allocation3], 0  ;;  %s2193_s0 = inlined_call_operand.vmem [shape: f32[2,24,3], index: 0, kind: input, shape index: {}]   ;;  %s2194_s1 = inlined_call_operand.hbm [shape: f32[3,64], index: 1, kind: input, shape index: {}]   ;;  %s2195_s2 = inlined_call_operand.hbm [shape: f32[1,64], index: 2, kind: input, shape index: {}]   ;;  %s2196_s3 = inlined_call_operand.vmem [shape: f32[64,128], index: 3, kind: input, shape index: {}]   ;;  %s2197_s4 = inlined_call_operand.hbm [shape: f32[1,128], index: 4, kind: input, shape index: {}]   ;;  %s2198_s5 = inlined_call_operand.hbm [shape: f32[128,1024], index: 5, kind: input, shape index: {}]   ;;  %s2199_s6 = inlined_call_operand.vmem [shape: f32[1,1024], index: 6, kind: input, shape index: {}]   ;;  %s2200_s7 = inlined_call_operand.hbm [shape: f32[2,1,1024], index: 7, kind: output, shape index: {}]  }
   0x1   :  { %13 = vsyncpa [#allocation6], 0 }
   0x2   :  { %14 = vsyncpa [#allocation9], 0 }
   0x3   :  { %15 = vsyncpa [#allocation4], 0 }
   0x4   :  { %17 = vsyncpa [#allocation4 + $0x1], 0  ;;  %s1850_s24 = smov 0   ;;  %s1852_s25 = smov 0  }
   0x5   :  { %s1854_s26 = smov 0   ;;  %s1856_s27 = smov 0  }
   0x6   :  { %s1858_s28 = smov 0   ;;  %s1860_s29 = smov 0  }
   0x7   :  { %s1862_s30 = smov 0   ;;  %s1864_s8 = smov 0  }
   0x8 LB: > { %2209 = sst [smem:[#allocation15_spill]] %s1776_s26  ;;  %s1255_s9 = sadd.s32 4294967295, %s1796_s8   ;;  %s1796_s8 = sphi %s1864_s8, %s23_s8   ;;  %s1792_s30 = sphi %s1862_s30, %s2230_s30   ;;  %s1788_s29 = sphi %s1860_s29, %s2229_s29   ;;  %s1784_s28 = sphi %s1858_s28, %s2228_s28   ;;  %s1780_s27 = sphi %s1856_s27, %s2233_s27   ;;  %s1776_s26 = sphi %s1854_s26, %s2226_s26   ;;  %s1772_s25 = sphi %s1852_s25, %s2232_s25   ;;  %s1768_s24 = sphi %s1850_s24, %s2231_s24  }
   0x9   : > { %2210 = sst [smem:[#allocation16_spill]] %s1788_s29  ;;  %s1256_s10 = sadd.s32 4294967294, %s1796_s8  }
   0xa   : > { %2211 = sst [smem:[#allocation17_spill]] %s1792_s30  ;;  %s32_s11 = sadd.s32 1, %s1788_s29 }
   0xb   : > { %s35_s12 = sadd.s32 1, %s1792_s30  ;;  %p33_p0 = scmp.ge.s32.totalorder %s32_s11, 3 }
   0xc   : > { %s196_s13 = sadd.s32 1, %s1776_s26  ;;  %p206_p1 = scmp.ne.s32.totalorder %s1776_s26, %s1772_s25 }
   0xd   : > { %p207_p2 = scmp.eq.s32.totalorder %s1255_s9, 5  ;;  %s2235_s11 = smov (%p33_p0, %s32_s11), 0 }
   0xe   : > { %2212 = sst [smem:[#allocation18_spill]] %s2235_s11  ;;  %s2237_s12 = smov (!%p33_p0, %s35_s12), %s1792_s30 }
   0xf   : > { %p1900_p3 = por %p207_p2, %p206_p1  ;;  %p212_p4 = scmp.ne.s32.totalorder %s1772_s25, %s1768_s24 }
  0x10   : > { %p37_p5 = scmp.ge.s32.totalorder %s2237_s12, 2  ;;  %p213_p6 = scmp.eq.s32.totalorder %s1256_s10, 5 }
  0x11   : > { %s2213_s14 = scalar_select %p1900_p3, 1, 0 }
  0x12   : > { %p1257_p7 = scmp.ge.s32.totalorder %s1796_s8, 1  ;;  %p220_p8 = scmp.lt.s32.totalorder %s1796_s8, 7 }
  0x13   : > { %s2239_s12 = smov (%p37_p5, %s2237_s12), 0  ;;  %p1910_p9 = por %p213_p6, %p212_p4 }
  0x14   : > { %2214 = sst [smem:[#allocation19_spill]] %s2239_s12  ;;  %p1914_p10 = pnand %p1257_p7, %p220_p8 }
  0x15   : > { %s2215_s15 = scalar_select %p1910_p9, 1, 0 }
  0x16   : > { %s2216_s16 = scalar_select %p1914_p10, 1, 0 }
  0x17   : > { %s193_s17 = ssub.s32 %s1792_s30, %s2239_s12  ;;  %p1477_p12 = pneg %p1914_p10 }
  0x18   : > { %p194_p11 = scmp.eq.s32.totalorder %s193_s17, 0  ;;  %p1922_p13 = scmp.eq.s32.totalorder %s1255_s9, 0 }
  0x19   : > { %s1798_s21 = smov [#allocation5]   ;;  %s1578_s17 = scalar_lea.hbm %s2195_s2, 16 }
  0x1a   : > { %s2217_s18 = scalar_select %p1922_p13, 1, 0 }
  0x1b   : > { %s1927_s19 = scalar_select %p194_p11, %s1776_s26, %s196_s13  }
  0x1c   : > { %p1931_p0 = pnand %p1922_p13, %p1477_p12  ;;  %s244_s22 = sshll.u32 %s1798_s21, 4  ;;  %s245_s22 = int_to_ptr.vmem [resolvable:$true] %s244_s22 }
  0x1d   : > { %2218 = sst [smem:[#allocation20_spill]] %s1927_s19  ;;  %p1579_p1 = scmp.ne.s32.totalorder %s2195_s2, %s1578_s17 }
  0x1e   : > { %p1943_p2 = pneg %p1931_p0  ;;  %p1585_p6 = scmp.lt.u32.totalorder %s1578_s17, %s2195_s2 }
  0x20   : > { %p1581_p4 = pnand %p1943_p2, %p1579_p1 }
  0x22   : > { %p1582_p5 = pneg %p1581_p4 }
  0x24   : > { %p1587_p7 = pnand %p1585_p6, %p1582_p5 }
  0x26   : > { %1590 = shalt.err (!%p1587_p7)
}
  0x27   : > { %s1591_s23 = scalar_lea.vmem %s245_s22, 16  ;;  %s1598_s12 = scalar_lea.vmem %s245_s22, 32 }
  0x28   : > { %p1592_p8 = scmp.ne.s32.totalorder %s245_s22, %s1591_s23  ;;  %p1599_p9 = scmp.lt.s32.totalorder %s245_s22, %s245_s22 }
  0x29   : > { %p1600_p3 = scmp.lt.s32.totalorder %s1598_s12, %s1591_s23 }
  0x2a   : > { %p1594_p11 = pnand %p1592_p8, %p1943_p2 }
  0x2b   : > { %p1601_p13 = por %p1600_p3, %p1599_p9 }
  0x2c   : > { %p1595_p12 = pneg %p1594_p11 }
  0x2e   : > { %p1602_p10 = pnand %p1601_p13, %p1595_p12 }
  0x30   : > { %1605 = shalt.err (!%p1602_p10)
}
  0x31   : > { %1483 = dma.hbm_to_vmem [thread:$0]  (!%p1931_p0), %s2195_s2, 16, %s245_s22, [#allocation6]  }
  0x32   : > { %s1799_s11 = smov [#allocation2]   ;;  %s1800_s21 = smov [#allocation7]  }
  0x33   : > { %s233_s17 = sshll.u32 %s1799_s11, 4  ;;  %s258_s30 = sshll.u32 %s1800_s21, 4  ;;  %s234_s17 = int_to_ptr.vmem [resolvable:$true] %s233_s17  ;;  %s1959_s30 = int_to_ptr.vmem [resolvable:$true] %s258_s30 }
  0x34   : > { %s1606_s23 = scalar_lea.hbm %s2194_s1, 64 }
  0x35   : > { %p1607_p3 = scmp.ne.s32.totalorder %s2194_s1, %s1606_s23  ;;  %p1613_p13 = scmp.lt.u32.totalorder %s1606_s23, %s2194_s1 }
  0x37   : > { %p1609_p9 = pnand %p1607_p3, %p1943_p2 }
  0x39   : > { %p1610_p10 = pneg %p1609_p9 }
  0x3b   : > { %p1615_p1 = pnand %p1613_p13, %p1610_p10 }
  0x3d   : > { %1618 = shalt.err (!%p1615_p1)
}
  0x3e   : > { %s1619_s9 = scalar_lea.vmem %s234_s17, 64  ;;  %p1627_p7 = scmp.lt.s32.totalorder %s234_s17, %s234_s17 }
  0x3f   : > { %p1620_p4 = scmp.ne.s32.totalorder %s234_s17, %s1619_s9  ;;  %p1628_p8 = scmp.lt.s32.totalorder %s1619_s9, %s1619_s9 }
  0x41   : > { %p1622_p5 = pnand %p1620_p4, %p1943_p2  ;;  %p1629_p11 = por %p1628_p8, %p1627_p7 }
  0x43   : > { %p1623_p6 = pneg %p1622_p5 }
  0x45   : > { %p1630_p12 = pnand %p1629_p11, %p1623_p6 }
  0x47   : > { %1633 = shalt.err (!%p1630_p12)
}
  0x48   : > { %1480 = dma.hbm_to_vmem [thread:$0]  (!%p1931_p0), %s2194_s1, 64, %s234_s17, [#allocation3]  }
  0x49   : > { %s1634_s21 = scalar_lea.hbm %s2197_s4, 16 }
  0x4a   : > { %p1635_p3 = scmp.ne.s32.totalorder %s2197_s4, %s1634_s21  ;;  %p1641_p13 = scmp.lt.u32.totalorder %s1634_s21, %s2197_s4 }
  0x4c   : > { %p1637_p9 = pnand %p1635_p3, %p1943_p2 }
  0x4e   : > { %p1638_p10 = pneg %p1637_p9 }
  0x50   : > { %p1643_p1 = pnand %p1641_p13, %p1638_p10 }
  0x52   : > { %1646 = shalt.err (!%p1643_p1)
}
  0x53   : > { %s1647_s17 = scalar_lea.vmem %s1959_s30, 16  ;;  %s1654_s9 = scalar_lea.vmem %s1959_s30, 32 }
  0x54   : > { %p1648_p4 = scmp.ne.s32.totalorder %s1959_s30, %s1647_s17  ;;  %p1655_p7 = scmp.lt.s32.totalorder %s1959_s30, %s1959_s30 }
  0x55   : > { %p1656_p8 = scmp.lt.s32.totalorder %s1654_s9, %s1647_s17 }
  0x56   : > { %p1650_p5 = pnand %p1648_p4, %p1943_p2 }
  0x57   : > { %p1657_p11 = por %p1656_p8, %p1655_p7 }
  0x58   : > { %p1651_p6 = pneg %p1650_p5 }
  0x5a   : > { %p1658_p12 = pnand %p1657_p11, %p1651_p6 }
  0x5c   : > { %1661 = shalt.err (!%p1658_p12)
}
  0x5d   : > { %1486 = dma.hbm_to_vmem [thread:$0]  (!%p1931_p0), %s2197_s4, 16, %s1959_s30, [#allocation6]  }
  0x5e   : > { %s1801_s19 = smov [#allocation8]   ;;  %s1662_s12 = scalar_lea.hbm %s2198_s5, 16384 }
  0x5f   : > { %s268_s11 = sshll.u32 %s1801_s19, 4  ;;  %p1663_p3 = scmp.ne.s32.totalorder %s2198_s5, %s1662_s12  ;;  %s269_s11 = int_to_ptr.vmem [resolvable:$true] %s268_s11 }
  0x60   : > { %p1669_p13 = scmp.lt.u32.totalorder %s1662_s12, %s2198_s5 }
  0x61   : > { %p1665_p9 = pnand %p1663_p3, %p1943_p2 }
  0x63   : > { %p1666_p10 = pneg %p1665_p9 }
  0x65   : > { %p1671_p1 = pnand %p1669_p13, %p1666_p10 }
  0x67   : > { %1674 = shalt.err (!%p1671_p1)
}
  0x68   : > { %s1675_s30 = scalar_lea.vmem %s269_s11, 16384  ;;  %p1683_p7 = scmp.lt.s32.totalorder %s269_s11, %s269_s11 }
  0x69   : > { %p1676_p4 = scmp.ne.s32.totalorder %s269_s11, %s1675_s30  ;;  %p1684_p8 = scmp.lt.s32.totalorder %s1675_s30, %s1675_s30 }
  0x6b   : > { %p1678_p5 = pnand %p1676_p4, %p1943_p2  ;;  %p1685_p11 = por %p1684_p8, %p1683_p7 }
  0x6d   : > { %p1679_p6 = pneg %p1678_p5 }
  0x6f   : > { %p1686_p12 = pnand %p1685_p11, %p1679_p6 }
  0x71   : > { %1689 = shalt.err (!%p1686_p12)
}
  0x72   : > { %s1802_s26 = smov 1024   ;;  %s1803_s29 = smov 64  }
  0x73   : > { %1489 = dma.hbm_to_vmem [thread:$0]  (!%p1931_p0), %s2198_s5, 16384, %s269_s11, [#allocation9], %s1802_s26, %s1802_s26, %s1803_s29  }
  0x74   : > { %p2221_p3 = scmp.ne.s32.totalorder %s2216_s16, 0 }
  0x75   : > { %p2222_p9 = scmp.ne.s32.totalorder (!%p2221_p3), %s2217_s18, 0 }
  0x76   : > { %298 = sbr.rel (%p2221_p3) target bundleno = 867 (0x363), region = 48 }
  0x7d   : > { %1751 = dma.done.wait (%p2222_p9), [#allocation3], 64  }
  0x7e   : > { %1753 = vsyncadd (%p2222_p9), [#allocation3], 4294967232 }
  0x7f   : > { %1755 = dma.done.wait (%p2222_p9), [#allocation6], 32  }
  0x80   : > { %1757 = vsyncadd (%p2222_p9), [#allocation6], 4294967264 }
  0x81   : > { %1759 = dma.done.wait (%p2222_p9), [#allocation9], 16384  }
  0x82   : > { %1761 = vsyncadd (%p2222_p9), [#allocation9], 4294950912  ;;  %s342_s16 = sand.u32 1, %s1772_s25   ;;  %p345_p0 = scmp.lt.s32.totalorder %s1784_s28, 1 }
  0x83   : > { %s1268_s20 = sshll.u32 %s342_s16, 3  ;;  %p347_p2 = scmp.lt.s32.totalorder %s1780_s27, 2 }
  0x84   : > { %s346_s13 = scalar_select %p345_p0, %s1784_s28, 1 }
  0x85   : > { %s348_s11 = scalar_select %p347_p2, %s1780_s27, 2 }
  0x86   : > { %s1458_s23 = smul.u32 3, %s346_s13  ;;  %s2045_s9 = scalar_lea.vmem [#allocation10], %s1268_s20 }
  0x87   : > { %p1270_p10 = scmp.ne.s32.totalorder %s1780_s27, 0 }
  0x88   : > { %s350_s12 = sadd.s32 %s1458_s23, %s348_s11  ;;  %v1804_v0 = vmov (!%p1270_p10), -inf  }
  0x89   : > { %s1269_s10 = sshll.u32 %s350_s12, 3  ;;  %356 = sbr.rel (%p1270_p10) target bundleno = 144 (0x90), region = 68  ;;  %357 = vst [vmem:[%s2045_s9] sm:$0xff] (!%p1270_p10), %v1804_v0 }
  0x8a   : > { %s352_s18 = scalar_lea.vmem %s2193_s0, %s1269_s10 }
  0x90 PF: > { %v359_v1 = vld [vmem:[#allocation2] sm:$0x7]  ;;  %vm509_vm0 = vcmask 1042432   ;;  %v358_v2 = vld [vmem:[%s352_s18] sm:$0xff]  ;;  %v1805_v3 = vmov 0.0   ;;  %vm1806_vm1 = vmmov 0  }
  0x91   : > { %1294 = vmatprep.subr.mxu0 %v1805_v3  ;;  %1296 = vmatprep.mubr.msk.f32.mxu0 %vm1806_vm1, %v1805_v3  ;;  %vm505_vm2 = vcmask 23552   ;;  %v361_v4 = vld [vmem:[%s2196_s3] sm:$0xff]  ;;  %v362_v5 = vld [vmem:[%s2196_s3 + $0x8] sm:$0xff]  ;;  %v363_v6 = vld [vmem:[%s2196_s3 + $0x10] sm:$0xff]  ;;  %v1807_v7 = vmov 0.0|0.0   ;;  %vm590_vm3 = vcmask 523264  }
  0x92   : > { %1295 = vmatpush3.msk.msra.mxu0 %vm509_vm0, %v359_v1  ;;  %1318 = vmatprep.subr.bf16.mxu1 %v1807_v7  ;;  %v1319_v8 = vpack.c.bf16 %v362_v5, %v361_v4  ;;  %v364_v9 = vld [vmem:[%s2196_s3 + $0x18] sm:$0xff]  ;;  %v365_v11 = vld [vmem:[%s2196_s3 + $0x20] sm:$0xff]  ;;  %v366_v12 = vld [vmem:[%s2196_s3 + $0x28] sm:$0xff]  ;;  %s1276_s29 = sshll.u32 %s1780_s27, 3  ;;  %s1282_s27 = sshll.u32 %s1784_s28, 7 }
  0x93   : > { %1297 = vmatmul.mubr.msk.f32.vlgmr.msra.gmra.mrb[0].mxu0 %vm505_vm2, %v358_v2  ;;  %1315 = vmatprep.mubr.msk.f32.mxu1 %vm1806_vm1, %v1805_v3  ;;  %v1322_v10 = vpack.c.bf16 %v364_v9, %v363_v6  ;;  %v1325_v13 = vpack.c.bf16 %v366_v12, %v365_v11  ;;  %v367_v14 = vld [vmem:[%s2196_s3 + $0x30] sm:$0xff]  ;;  %v368_v15 = vld [vmem:[%s2196_s3 + $0x38] sm:$0xff]  ;;  %v373_v19 = vld [vmem:[#allocation8 + $0x18] sm:$0xff]  ;;  %s1138_s20 = sshll.u32 %s2045_s9, 4  ;;  %s2137_s23 = scalar_lea.hbm %s2200_s7, %s1282_s27  ;;  %s2139_s20 = int_to_ptr.vmem [resolvable:$true] %s1138_s20 }
  0x94   : > { %1320 = vmatpush3.bf16.msra.mxu1 %v1319_v8  ;;  %770 = vmatprep.mubr.f32.mxu0 %v1805_v3  ;;  %v1328_v16 = vpack.c.bf16 %v368_v15, %v367_v14  ;;  %v371_v17 = vld [vmem:[#allocation8 + $0x8] sm:$0xff]  ;;  %v381_v21 = vld [vmem:[#allocation8 + $0x58] sm:$0xff]  ;;  %v370_v22 = vld [vmem:[#allocation8] sm:$0xff]  ;;  %s1124_s12 = scalar_lea.sflag [#allocation4], %s342_s16  ;;  %s1690_s10 = scalar_lea.vmem %s2139_s20, 128 }
  0x95   : > { %1321 = vmatprep.subr.bf16.mxu1 %v1807_v7  ;;  %v379_v18 = vld [vmem:[#allocation8 + $0x48] sm:$0xff]  ;;  %v378_v23 = vld [vmem:[#allocation8 + $0x40] sm:$0xff]  ;;  %v1362_v24 = vpack.c.bf16 %v381_v21, %v373_v19  ;;  %v1271_v62 = vld [vmem:[#allocation5] ss:$0 sm:$0xff]  ;;  %p1691_p13 = scmp.ne.s32.totalorder %s2139_s20, %s1690_s10  ;;  %p2223_p1 = scmp.ne.s32.totalorder %s2213_s14, 0 }
  0x96   : > { %v1330_v20 = vpack.c.bf16 %v379_v18, %v371_v17  ;;  %v1332_v25 = vpack.c.bf16 %v378_v23, %v370_v22  ;;  %v387_v26 = vld [vmem:[#allocation8 + $0x88] sm:$0xff]  ;;  %v386_v29 = vld [vmem:[#allocation8 + $0x80] sm:$0xff]  ;;  %v372_v63 = vld [vmem:[#allocation8 + $0x10] sm:$0xff]  ;;  %s1809_s28 = smov [#allocation10]  }
  0x97   : > { %v395_v27 = vld [vmem:[#allocation8 + $0xc8] sm:$0xff]  ;;  %v394_v30 = vld [vmem:[#allocation8 + $0xc0] sm:$0xff]  ;;  %v380_v0 = vld [vmem:[#allocation8 + $0x50] sm:$0xff]  ;;  %p1692_p4 = pnand %p1691_p13, %p2223_p1  ;;  %s1694_s22 = sshll.u32 %s1809_s28, 4  ;;  %s1695_s22 = int_to_ptr.vmem [resolvable:$false] %s1694_s22 }
  0x98   : > { %1323 = vmatpush3.bf16.msra.mxu1 %v1322_v10  ;;  %1331 = vmatprep.subr.bf16.mxu0 %v1330_v20  ;;  %v1334_v28 = vpack.c.bf16 %v395_v27, %v387_v26  ;;  %v1336_v31 = vpack.c.bf16 %v394_v30, %v386_v29  ;;  %v403_v32 = vld [vmem:[#allocation8 + $0x108] sm:$0xff]  ;;  %v402_v35 = vld [vmem:[#allocation8 + $0x100] sm:$0xff]  ;;  %v389_v2 = vld [vmem:[#allocation8 + $0x98] sm:$0xff]  ;;  %s1696_s17 = scalar_lea.vmem %s1695_s22, 256  ;;  %p1697_p6 = scmp.lt.s32.totalorder %s2139_s20, %s1695_s22 }
  0x99   : > { %1324 = vmatprep.subr.bf16.mxu1 %v1807_v7  ;;  %1333 = vmatpush1.bf16.msra.mxu0 %v1332_v25  ;;  %v411_v33 = vld [vmem:[#allocation8 + $0x148] sm:$0xff]  ;;  %v410_v36 = vld [vmem:[#allocation8 + $0x140] sm:$0xff]  ;;  %v397_v4 = vld [vmem:[#allocation8 + $0xd8] sm:$0xff]  ;;  %p1693_p5 = pneg %p1692_p4  ;;  %p1698_p7 = scmp.lt.s32.totalorder %s1696_s17, %s1690_s10 }
  0x9a   : > { %1335 = vmatprep.subr.bf16.mxu0 %v1334_v28  ;;  %v1338_v34 = vpack.c.bf16 %v411_v33, %v403_v32  ;;  %v1340_v37 = vpack.c.bf16 %v410_v36, %v402_v35  ;;  %v419_v38 = vld [vmem:[#allocation8 + $0x188] sm:$0xff]  ;;  %v418_v41 = vld [vmem:[#allocation8 + $0x180] sm:$0xff]  ;;  %v1366_v9 = vpack.c.bf16 %v397_v4, %v389_v2  ;;  %v388_v10 = vld [vmem:[#allocation8 + $0x90] sm:$0xff] }
  0x9b   : > { %v427_v39 = vld [vmem:[#allocation8 + $0x1c8] sm:$0xff]  ;;  %v426_v42 = vld [vmem:[#allocation8 + $0x1c0] sm:$0xff]  ;;  %v396_v11 = vld [vmem:[#allocation8 + $0xd0] sm:$0xff]  ;;  %p1699_p8 = por %p1698_p7, %p1697_p6 }
  0x9c   : > { %1326 = vmatpush3.bf16.msra.mxu1 %v1325_v13  ;;  %v1342_v40 = vpack.c.bf16 %v427_v39, %v419_v38  ;;  %v1344_v43 = vpack.c.bf16 %v426_v42, %v418_v41  ;;  %v435_v44 = vld [vmem:[#allocation8 + $0x208] sm:$0xff]  ;;  %v434_v47 = vld [vmem:[#allocation8 + $0x200] sm:$0xff]  ;;  %v405_v12 = vld [vmem:[#allocation8 + $0x118] sm:$0xff]  ;;  %v1368_v14 = vpack.c.bf16 %v396_v11, %v388_v10 }
  0x9d   : > { %1327 = vmatprep.subr.bf16.mxu1 %v1807_v7  ;;  %1337 = vmatpush1.bf16.msra.mxu0 %v1336_v31  ;;  %v443_v45 = vld [vmem:[#allocation8 + $0x248] sm:$0xff]  ;;  %v442_v48 = vld [vmem:[#allocation8 + $0x240] sm:$0xff]  ;;  %v1364_v7 = vpack.c.bf16 %v380_v0, %v372_v63  ;;  %v413_v13 = vld [vmem:[#allocation8 + $0x158] sm:$0xff]  ;;  %p1700_p11 = pnand %p1699_p8, %p1693_p5 }
  0x9e   : > { %1339 = vmatprep.subr.bf16.mxu0 %v1338_v34  ;;  %v1346_v46 = vpack.c.bf16 %v443_v45, %v435_v44  ;;  %v1348_v49 = vpack.c.bf16 %v442_v48, %v434_v47  ;;  %v451_v50 = vld [vmem:[#allocation8 + $0x288] sm:$0xff]  ;;  %v450_v53 = vld [vmem:[#allocation8 + $0x280] sm:$0xff]  ;;  %v1370_v15 = vpack.c.bf16 %v413_v13, %v405_v12  ;;  %v412_v17 = vld [vmem:[#allocation8 + $0x150] sm:$0xff] }
  0x9f   : > { %v459_v51 = vld [vmem:[#allocation8 + $0x2c8] sm:$0xff]  ;;  %v458_v54 = vld [vmem:[#allocation8 + $0x2c0] sm:$0xff]  ;;  %v421_v18 = vld [vmem:[#allocation8 + $0x198] sm:$0xff] }
  0xa0   : > { %1329 = vmatpush3.bf16.msra.mxu1 %v1328_v16  ;;  %v1350_v52 = vpack.c.bf16 %v459_v51, %v451_v50  ;;  %v1352_v55 = vpack.c.bf16 %v458_v54, %v450_v53  ;;  %v467_v56 = vld [vmem:[#allocation8 + $0x308] sm:$0xff]  ;;  %v466_v59 = vld [vmem:[#allocation8 + $0x300] sm:$0xff]  ;;  %v404_v16 = vld [vmem:[#allocation8 + $0x110] sm:$0xff] }
  0xa1   : > { %1363 = vmatprep.subr.bf16.mxu1 %v1362_v24  ;;  %1341 = vmatpush1.bf16.msra.mxu0 %v1340_v37  ;;  %v475_v57 = vld [vmem:[#allocation8 + $0x348] sm:$0xff]  ;;  %v474_v60 = vld [vmem:[#allocation8 + $0x340] sm:$0xff]  ;;  %v429_v19 = vld [vmem:[#allocation8 + $0x1d8] sm:$0xff]  ;;  %v1372_v20 = vpack.c.bf16 %v412_v17, %v404_v16 }
  0xa2   : > { %1343 = vmatprep.subr.bf16.mxu0 %v1342_v40  ;;  %v1354_v58 = vpack.c.bf16 %v475_v57, %v467_v56  ;;  %v1356_v61 = vpack.c.bf16 %v474_v60, %v466_v59  ;;  %v1374_v21 = vpack.c.bf16 %v429_v19, %v421_v18  ;;  %v420_v22 = vld [vmem:[#allocation8 + $0x190] sm:$0xff]  ;;  %v437_v24 = vld [vmem:[#allocation8 + $0x218] sm:$0xff]  ;;  %v491_v44 = vld [vmem:[#allocation8 + $0x3c8] sm:$0xff] }
  0xa3   : > { %v428_v23 = vld [vmem:[#allocation8 + $0x1d0] sm:$0xff]  ;;  %v445_v25 = vld [vmem:[#allocation8 + $0x258] sm:$0xff]  ;;  %v482_v48 = vld [vmem:[#allocation8 + $0x380] sm:$0xff] }
  0xa4   : > { %v1376_v26 = vpack.c.bf16 %v428_v23, %v420_v22  ;;  %v1378_v27 = vpack.c.bf16 %v445_v25, %v437_v24  ;;  %v436_v28 = vld [vmem:[#allocation8 + $0x210] sm:$0xff]  ;;  %v453_v30 = vld [vmem:[#allocation8 + $0x298] sm:$0xff]  ;;  %v383_v56 = vld [vmem:[#allocation8 + $0x68] sm:$0xff] }
  0xa5   : > { %1345 = vmatpush1.bf16.msra.mxu0 %v1344_v43  ;;  %v444_v29 = vld [vmem:[#allocation8 + $0x250] sm:$0xff]  ;;  %v461_v31 = vld [vmem:[#allocation8 + $0x2d8] sm:$0xff]  ;;  %v483_v43 = vld [vmem:[#allocation8 + $0x388] sm:$0xff] }
  0xa6   : > { %1347 = vmatprep.subr.bf16.mxu0 %v1346_v46  ;;  %v1380_v32 = vpack.c.bf16 %v444_v29, %v436_v28  ;;  %v1382_v33 = vpack.c.bf16 %v461_v31, %v453_v30  ;;  %v452_v34 = vld [vmem:[#allocation8 + $0x290] sm:$0xff]  ;;  %v469_v36 = vld [vmem:[#allocation8 + $0x318] sm:$0xff]  ;;  %v1358_v46 = vpack.c.bf16 %v491_v44, %v483_v43  ;;  %v382_v63 = vld [vmem:[#allocation8 + $0x60] sm:$0xff] }
  0xa7   : > { %v460_v35 = vld [vmem:[#allocation8 + $0x2d0] sm:$0xff]  ;;  %v477_v37 = vld [vmem:[#allocation8 + $0x358] sm:$0xff]  ;;  %v391_v2 = vld [vmem:[#allocation8 + $0xa8] sm:$0xff] }
  0xa8   : > { %v1384_v38 = vpack.c.bf16 %v460_v35, %v452_v34  ;;  %v1386_v39 = vpack.c.bf16 %v477_v37, %v469_v36  ;;  %v468_v40 = vld [vmem:[#allocation8 + $0x310] sm:$0xff]  ;;  %v485_v45 = vld [vmem:[#allocation8 + $0x398] sm:$0xff]  ;;  %v390_v12 = vld [vmem:[#allocation8 + $0xa0] sm:$0xff] }
  0xa9   : > { %1349 = vmatpush1.bf16.msra.mxu0 %v1348_v49  ;;  %v476_v41 = vld [vmem:[#allocation8 + $0x350] sm:$0xff]  ;;  %v493_v47 = vld [vmem:[#allocation8 + $0x3d8] sm:$0xff]  ;;  %v490_v49 = vld [vmem:[#allocation8 + $0x3c0] sm:$0xff] }
  0xaa   : > { %1351 = vmatprep.subr.bf16.mxu0 %v1350_v52  ;;  %v1388_v42 = vpack.c.bf16 %v476_v41, %v468_v40  ;;  %v1390_v50 = vpack.c.bf16 %v493_v47, %v485_v45  ;;  %v1360_v51 = vpack.c.bf16 %v490_v49, %v482_v48  ;;  %v484_v52 = vld [vmem:[#allocation8 + $0x390] sm:$0xff]  ;;  %v377_v57 = vld [vmem:[#allocation8 + $0x38] sm:$0xff]  ;;  %v398_v13 = vld [vmem:[#allocation8 + $0xe0] sm:$0xff] }
  0xab   : > { %v492_v53 = vld [vmem:[#allocation8 + $0x3d0] sm:$0xff]  ;;  %v385_v59 = vld [vmem:[#allocation8 + $0x78] sm:$0xff]  ;;  %v407_v19 = vld [vmem:[#allocation8 + $0x128] sm:$0xff]  ;;  %v1400_v23 = vpack.c.bf16 %v398_v13, %v390_v12 }
  0xac   : > { %v1392_v54 = vpack.c.bf16 %v492_v53, %v484_v52  ;;  %v1426_v60 = vpack.c.bf16 %v385_v59, %v377_v57  ;;  %v376_v0 = vld [vmem:[#allocation8 + $0x30] sm:$0xff]  ;;  %v417_v22 = vld [vmem:[#allocation8 + $0x178] sm:$0xff]  ;;  %v406_v25 = vld [vmem:[#allocation8 + $0x120] sm:$0xff] }
  0xad   : > { %1353 = vmatpush1.bf16.msra.mxu0 %v1352_v55  ;;  %v375_v55 = vld [vmem:[#allocation8 + $0x28] sm:$0xff]  ;;  %v392_v17 = vld [vmem:[#allocation8 + $0xb0] sm:$0xff]  ;;  %v433_v34 = vld [vmem:[#allocation8 + $0x1f8] sm:$0xff] }
  0xae   : > { %1355 = vmatprep.subr.bf16.mxu0 %v1354_v58  ;;  %v1394_v58 = vpack.c.bf16 %v383_v56, %v375_v55  ;;  %v400_v18 = vld [vmem:[#allocation8 + $0xf0] sm:$0xff]  ;;  %v423_v31 = vld [vmem:[#allocation8 + $0x1a8] sm:$0xff]  ;;  %v422_v37 = vld [vmem:[#allocation8 + $0x1a0] sm:$0xff] }
  0xaf   : > { %v1432_v24 = vpack.c.bf16 %v400_v18, %v392_v17  ;;  %v408_v29 = vld [vmem:[#allocation8 + $0x130] sm:$0xff]  ;;  %v439_v43 = vld [vmem:[#allocation8 + $0x228] sm:$0xff]  ;;  %v441_v45 = vld [vmem:[#allocation8 + $0x238] sm:$0xff] }
  0xb0   : > { %v416_v30 = vld [vmem:[#allocation8 + $0x170] sm:$0xff]  ;;  %v447_v44 = vld [vmem:[#allocation8 + $0x268] sm:$0xff]  ;;  %v438_v48 = vld [vmem:[#allocation8 + $0x220] sm:$0xff] }
  0xb1   : > { %1357 = vmatpush1.bf16.msra.mxu0 %v1356_v61  ;;  %v1274_v61 = vld [vmem:[#allocation7] ss:$0 sm:$0xff]  ;;  %v1436_v36 = vpack.c.bf16 %v416_v30, %v408_v29  ;;  %v424_v41 = vld [vmem:[#allocation8 + $0x1b0] sm:$0xff]  ;;  %v446_v49 = vld [vmem:[#allocation8 + $0x260] sm:$0xff]  ;;  %v666_v30 = vlaneseq }
  0xb2   : > { %1359 = vmatprep.subr.bf16.mxu0 %v1358_v46  ;;  %v449_v46 = vld [vmem:[#allocation8 + $0x278] sm:$0xff]  ;;  %v440_v52 = vld [vmem:[#allocation8 + $0x230] sm:$0xff]  ;;  %v463_v55 = vld [vmem:[#allocation8 + $0x2e8] sm:$0xff] }
  0xb3   : > { %v448_v53 = vld [vmem:[#allocation8 + $0x270] sm:$0xff]  ;;  %v457_v56 = vld [vmem:[#allocation8 + $0x2b8] sm:$0xff]  ;;  %v495_v17 = vld [vmem:[#allocation8 + $0x3e8] sm:$0xff] }
  0xb4   : > { %v465_v57 = vld [vmem:[#allocation8 + $0x2f8] sm:$0xff]  ;;  %v1444_v59 = vpack.c.bf16 %v448_v53, %v440_v52  ;;  %v472_v13 = vld [vmem:[#allocation8 + $0x330] sm:$0xff] }
  0xb5   : > { %1361 = vmatpush1.bf16.msra.mxu0 %v1360_v51  ;;  %v1442_v51 = vpack.c.bf16 %v449_v46, %v441_v45  ;;  %v489_v18 = vld [vmem:[#allocation8 + $0x3b8] sm:$0xff] }
  0xb6   : > { %1395 = vmatprep.subr.bf16.mxu0 %v1394_v58  ;;  %v1412_v58 = vpack.c.bf16 %v446_v49, %v438_v48 }
 0x166   : > { %v579_v1 = vpop.f32.mrb[0].mxu0 }
 0x167   : > { %v580_v5 = vadd.f32 %v1271_v62, %v579_v1  ;;  %v1298_v6 = vpop.f32.mrb[1].mxu0  ;;  %v374_v62 = vld [vmem:[#allocation8 + $0x20] sm:$0xff]  ;;  %v384_v1 = vld [vmem:[#allocation8 + $0x70] sm:$0xff] }
 0x168   : > { %v393_v6 = vld [vmem:[#allocation8 + $0xb8] sm:$0xff]  ;;  %v1396_v10 = vpack.c.bf16 %v382_v63, %v374_v62  ;;  %v1428_v11 = vpack.c.bf16 %v384_v1, %v376_v0  ;;  %v1446_v63 = vpack.c.bf16 %v465_v57, %v457_v56  ;;  %v456_v0 = vld [vmem:[#allocation8 + $0x2b0] sm:$0xff] }
 0x169   : > { %v583_v8 = vmax.f32 %v580_v5, 0.0  ;;  %v399_v5 = vld [vmem:[#allocation8 + $0xe8] sm:$0xff]  ;;  %v464_v1 = vld [vmem:[#allocation8 + $0x2f0] sm:$0xff] }
 0x16b   : > { %1316 = vmatmul.mubr.msk.f32.vlgmr.msra.gmra.mrb[0].mxu1 %vm590_vm3, %v583_v8 }
 0x16c   : > { %1365 = vmatpush1.bf16.msra.mxu1 %v1364_v7  ;;  %841 = vmatprep.mubr.f32.mxu1 %v1805_v3  ;;  %v401_v7 = vld [vmem:[#allocation8 + $0xf8] sm:$0xff] }
 0x16d   : > { %1367 = vmatprep.subr.bf16.mxu1 %v1366_v9  ;;  %v1430_v16 = vpack.c.bf16 %v401_v7, %v393_v6  ;;  %v481_v6 = vld [vmem:[#allocation8 + $0x378] sm:$0xff] }
 0x170   : > { %1369 = vmatpush1.bf16.msra.mxu1 %v1368_v14 }
 0x171   : > { %1371 = vmatprep.subr.bf16.mxu1 %v1370_v15  ;;  %v1398_v15 = vpack.c.bf16 %v399_v5, %v391_v2  ;;  %v471_v2 = vld [vmem:[#allocation8 + $0x328] sm:$0xff]  ;;  %v473_v5 = vld [vmem:[#allocation8 + $0x338] sm:$0xff] }
 0x172   : > { %v1450_v12 = vpack.c.bf16 %v481_v6, %v473_v5 }
 0x174   : > { %1373 = vmatpush1.bf16.msra.mxu1 %v1372_v20  ;;  %v415_v20 = vld [vmem:[#allocation8 + $0x168] sm:$0xff] }
 0x175   : > { %1375 = vmatprep.subr.bf16.mxu1 %v1374_v21  ;;  %v409_v21 = vld [vmem:[#allocation8 + $0x138] sm:$0xff] }
 0x176   : > { %v1434_v28 = vpack.c.bf16 %v417_v22, %v409_v21  ;;  %v486_v22 = vld [vmem:[#allocation8 + $0x3a0] sm:$0xff] }
 0x178   : > { %1377 = vmatpush1.bf16.msra.mxu1 %v1376_v26  ;;  %v414_v26 = vld [vmem:[#allocation8 + $0x160] sm:$0xff] }
 0x179   : > { %1379 = vmatprep.subr.bf16.mxu1 %v1378_v27  ;;  %v1402_v27 = vpack.c.bf16 %v415_v20, %v407_v19  ;;  %v1404_v35 = vpack.c.bf16 %v414_v26, %v406_v25  ;;  %v497_v19 = vld [vmem:[#allocation8 + $0x3f8] sm:$0xff]  ;;  %v494_v25 = vld [vmem:[#allocation8 + $0x3e0] sm:$0xff]  ;;  %v488_v26 = vld [vmem:[#allocation8 + $0x3b0] sm:$0xff] }
 0x17c   : > { %1381 = vmatpush1.bf16.msra.mxu1 %v1380_v32  ;;  %v431_v32 = vld [vmem:[#allocation8 + $0x1e8] sm:$0xff] }
 0x17d   : > { %1383 = vmatprep.subr.bf16.mxu1 %v1382_v33  ;;  %v425_v33 = vld [vmem:[#allocation8 + $0x1b8] sm:$0xff] }
 0x17e   : > { %v1438_v40 = vpack.c.bf16 %v433_v34, %v425_v33  ;;  %v2094_v34 = vld [vmem:[%s2199_s6] sm:$0xff] }
 0x180   : > { %1385 = vmatpush1.bf16.msra.mxu1 %v1384_v38  ;;  %v430_v38 = vld [vmem:[#allocation8 + $0x1e0] sm:$0xff] }
 0x181   : > { %1387 = vmatprep.subr.bf16.mxu1 %v1386_v39  ;;  %v1406_v39 = vpack.c.bf16 %v431_v32, %v423_v31  ;;  %v1408_v47 = vpack.c.bf16 %v430_v38, %v422_v37  ;;  %v2086_v31 = vshrl.u32 %v666_v30, 7  ;;  %v1001_v37 = vstv %s1276_s29 }
 0x183   : > { %v668_v32 = vsub.s32 0, %v2086_v31  ;;  %v676_v33 = vsub.s32 2, %v2086_v31  ;;  %v688_v30 = vsub.s32 5, %v2086_v31 }
 0x184   : > { %1389 = vmatpush1.bf16.msra.mxu1 %v1388_v42  ;;  %v432_v42 = vld [vmem:[#allocation8 + $0x1f0] sm:$0xff] }
 0x185   : > { %1391 = vmatprep.subr.bf16.mxu1 %v1390_v50  ;;  %v1410_v50 = vpack.c.bf16 %v447_v44, %v439_v43  ;;  %v677_v38 = vrot.slane %v2094_v34, %v676_v33 }
 0x188   : > { %1393 = vmatpush1.bf16.msra.mxu1 %v1392_v54  ;;  %v455_v54 = vld [vmem:[#allocation8 + $0x2a8] sm:$0xff] }
 0x189   : > { %1427 = vmatprep.subr.bf16.mxu1 %v1426_v60  ;;  %v454_v60 = vld [vmem:[#allocation8 + $0x2a0] sm:$0xff]  ;;  %v1414_v62 = vpack.c.bf16 %v463_v55, %v455_v54 }
 0x23e   : > { %v660_v4 = vpop.f32.mrb[0].mxu1 }
 0x23f   : > { %v661_v8 = vadd.f32 %v1274_v61, %v660_v4  ;;  %v1317_v9 = vpop.f32.mrb[1].mxu1  ;;  %v462_v61 = vld [vmem:[#allocation8 + $0x2e0] sm:$0xff]  ;;  %v479_v4 = vld [vmem:[#allocation8 + $0x368] sm:$0xff] }
 0x240   : > { %v1416_v7 = vpack.c.bf16 %v462_v61, %v454_v60  ;;  %v470_v9 = vld [vmem:[#allocation8 + $0x320] sm:$0xff] }
 0x241   : > { %v2078_v14 = vmax.f32 %v661_v8, 0.0  ;;  %v1448_v8 = vpack.c.bf16 %v464_v1, %v456_v0  ;;  %v1808_v0 = vmov 1966171168  }
 0x242   : > { %v1076_v1 = vunpack.c.l.s4 %v1808_v0 }
 0x243   : > { %771 = vmatmul.mubr.f32.vlgmr.msra.gmra.mrb[2].mxu0 %v2078_v14  ;;  %842 = vmatmul.mubr.f32.vlgmr.msra.gmra.mrb[2].mxu1 %v2078_v14 }
 0x244   : > { %1397 = vmatpush1.bf16.msra.mxu0 %v1396_v10  ;;  %1429 = vmatpush1.bf16.msra.mxu1 %v1428_v11  ;;  %v478_v10 = vld [vmem:[#allocation8 + $0x360] sm:$0xff]  ;;  %v1418_v11 = vpack.c.bf16 %v479_v4, %v471_v2 }
 0x245   : > { %1399 = vmatprep.subr.bf16.mxu0 %v1398_v15  ;;  %1431 = vmatprep.subr.bf16.mxu1 %v1430_v16  ;;  %v480_v15 = vld [vmem:[#allocation8 + $0x370] sm:$0xff]  ;;  %v487_v16 = vld [vmem:[#allocation8 + $0x3a8] sm:$0xff]  ;;  %v1420_v20 = vpack.c.bf16 %v478_v10, %v470_v9 }
 0x246   : > { %912 = vmatprep.mubr.f32.mxu0 %v1805_v3  ;;  %983 = vmatprep.mubr.f32.mxu1 %v1805_v3  ;;  %v1440_v3 = vpack.c.bf16 %v432_v42, %v424_v41  ;;  %v1452_v21 = vpack.c.bf16 %v480_v15, %v472_v13 }
 0x248   : > { %1401 = vmatpush1.bf16.msra.mxu0 %v1400_v23  ;;  %1433 = vmatpush1.bf16.msra.mxu1 %v1432_v24  ;;  %v1422_v23 = vpack.c.bf16 %v495_v17, %v487_v16  ;;  %v1454_v24 = vpack.c.bf16 %v497_v19, %v489_v18 }
 0x249   : > { %1403 = vmatprep.subr.bf16.mxu0 %v1402_v27  ;;  %1435 = vmatprep.subr.bf16.mxu1 %v1434_v28  ;;  %v496_v27 = vld [vmem:[#allocation8 + $0x3f0] sm:$0xff]  ;;  %v1424_v28 = vpack.c.bf16 %v494_v25, %v486_v22 }
 0x24a   : > { %v1456_v29 = vpack.c.bf16 %v496_v27, %v488_v26 }
 0x24c   : > { %1405 = vmatpush1.bf16.msra.mxu0 %v1404_v35  ;;  %1437 = vmatpush1.bf16.msra.mxu1 %v1436_v36  ;;  %v672_v35 = vsub.s32 1, %v2086_v31  ;;  %v680_v36 = vsub.s32 3, %v2086_v31 }
 0x24d   : > { %1407 = vmatprep.subr.bf16.mxu0 %v1406_v39  ;;  %1439 = vmatprep.subr.bf16.mxu1 %v1438_v40  ;;  %v2101_v39 = vadd.s32 %v1001_v37, %v2086_v31 }
 0x24e   : > { %v673_v40 = vrot.slane %v2094_v34, %v672_v35  ;;  %v681_v41 = vrot.slane %v2094_v34, %v680_v36  ;;  %v689_v36 = vrot.slane %v2094_v34, %v688_v30 }
 0x24f   : > { %vm1003_vm4 = vcmp.lt.s32.totalorder %v2101_v39, 20 }
 0x250   : > { %1409 = vmatpush1.bf16.msra.mxu0 %v1408_v47  ;;  %1441 = vmatpush1.bf16.msra.mxu1 %v1440_v3 }
 0x251   : > { %1411 = vmatprep.subr.bf16.mxu0 %v1410_v50  ;;  %1443 = vmatprep.subr.bf16.mxu1 %v1442_v51 }
 0x254   : > { %1413 = vmatpush1.bf16.msra.mxu0 %v1412_v58  ;;  %1445 = vmatpush1.bf16.msra.mxu1 %v1444_v59 }
 0x255   : > { %1415 = vmatprep.subr.bf16.mxu0 %v1414_v62  ;;  %1447 = vmatprep.subr.bf16.mxu1 %v1446_v63 }
 0x258   : > { %1417 = vmatpush1.bf16.msra.mxu0 %v1416_v7  ;;  %1449 = vmatpush1.bf16.msra.mxu1 %v1448_v8 }
 0x259   : > { %1419 = vmatprep.subr.bf16.mxu0 %v1418_v11  ;;  %1451 = vmatprep.subr.bf16.mxu1 %v1450_v12  ;;  %v1077_v11 = vunpack.c.0.s8 %v1076_v1 }
 0x25c   : > { %1421 = vmatpush1.bf16.msra.mxu0 %v1420_v20  ;;  %1453 = vmatpush1.bf16.msra.mxu1 %v1452_v21  ;;  %v1080_v21 = vsub.s32 %v1077_v11, %v2086_v31 }
 0x25d   : > { %1423 = vmatprep.subr.bf16.mxu0 %v1422_v23  ;;  %1455 = vmatprep.subr.bf16.mxu1 %v1454_v24 }
 0x260   : > { %1425 = vmatpush1.bf16.msra.mxu0 %v1424_v28  ;;  %1457 = vmatpush1.bf16.msra.mxu1 %v1456_v29  ;;  %v684_v28 = vsub.s32 4, %v2086_v31  ;;  %v692_v29 = vsub.s32 6, %v2086_v31 }
 0x262   : > { %v685_v33 = vrot.slane %v2094_v34, %v684_v28  ;;  %v693_v35 = vrot.slane %v2094_v34, %v692_v29 }
 0x263   : > { %913 = vmatmul.mubr.f32.vlgmr.msra.gmra.mrb[4].mxu0 %v2078_v14  ;;  %984 = vmatmul.mubr.f32.vlgmr.msra.gmra.mrb[4].mxu1 %v2078_v14  ;;  %v669_v14 = vrot.slane %v2094_v34, %v668_v32  ;;  %v696_v32 = vsub.s32 7, %v2086_v31 }
 0x265   : > { %v697_v37 = vrot.slane %v2094_v34, %v696_v32 }
 0x316   : > { %v772_v42 = vpop.f32.mrb[2].mxu0  ;;  %v843_v43 = vpop.f32.mrb[2].mxu1 }
 0x317   : > { %v773_v44 = vadd.f32 %v772_v42, %v669_v14  ;;  %v844_v45 = vadd.f32 %v843_v43, %v677_v38  ;;  %v774_v46 = vpop.f32.mrb[3].mxu0  ;;  %v845_v47 = vpop.f32.mrb[3].mxu1 }
 0x318   : > { %v775_v3 = vadd.f32 %v774_v46, %v673_v40  ;;  %v846_v48 = vadd.f32 %v845_v47, %v681_v41 }
 0x319   : > { %v990_v49 = vmax.f32 %v773_v44, 0.0  ;;  %v992_v50 = vmax.f32 %v844_v45, 0.0 }
 0x31a   : > { %v991_v51 = vmax.f32 %v775_v3, 0.0  ;;  %v993_v52 = vmax.f32 %v846_v48, 0.0 }
 0x31b   : > { %v1006_v53 = vsel %vm1003_vm4, %v990_v49, -inf  ;;  %v1008_v54 = vsel %vm1003_vm4, %v992_v50, -inf }
 0x31c   : > { %v1015_v55 = vrot.slane %v1006_v53, 4  ;;  %v1027_v56 = vrot.slane %v1008_v54, 4  ;;  %v1007_v57 = vsel %vm1003_vm4, %v991_v51, -inf  ;;  %v1009_v58 = vsel %vm1003_vm4, %v993_v52, -inf }
 0x31d   : > { %v1021_v59 = vrot.slane %v1007_v57, 4  ;;  %v1033_v60 = vrot.slane %v1009_v58, 4 }
 0x31e   : > { %v1016_v61 = vmax.f32 %v1006_v53, %v1015_v55  ;;  %v1028_v62 = vmax.f32 %v1008_v54, %v1027_v56 }
 0x31f   : > { %v1022_v63 = vmax.f32 %v1007_v57, %v1021_v59  ;;  %v1034_v2 = vmax.f32 %v1009_v58, %v1033_v60 }
 0x320   : > { %v1017_v4 = vrot.slane %v1016_v61, 2  ;;  %v1029_v5 = vrot.slane %v1028_v62, 2 }
 0x321   : > { %v1023_v6 = vrot.slane %v1022_v63, 2  ;;  %v1035_v7 = vrot.slane %v1034_v2, 2 }
 0x322   : > { %v1018_v8 = vmax.f32 %v1016_v61, %v1017_v4  ;;  %v1030_v9 = vmax.f32 %v1028_v62, %v1029_v5 }
 0x323   : > { %v1024_v10 = vmax.f32 %v1022_v63, %v1023_v6  ;;  %v1036_v12 = vmax.f32 %v1034_v2, %v1035_v7 }
 0x324   : > { %v1019_v13 = vrot.slane %v1018_v8, 1  ;;  %v1031_v15 = vrot.slane %v1030_v9, 1 }
 0x325   : > { %v1025_v16 = vrot.slane %v1024_v10, 1  ;;  %v1037_v17 = vrot.slane %v1036_v12, 1 }
 0x326   : > { %v1020_v18 = vmax.f32 %v1018_v8, %v1019_v13  ;;  %v1032_v19 = vmax.f32 %v1030_v9, %v1031_v15 }
 0x327   : > { %v1026_v20 = vmax.f32 %v1024_v10, %v1025_v16  ;;  %v1038_v22 = vmax.f32 %v1036_v12, %v1037_v17 }
 0x329   : > { %v1071_v23 = vcombine.low %v1020_v18, %v1026_v20  ;;  %v1072_v24 = vcombine.low %v1032_v19, %v1038_v22  ;;  %v1014_v19 = vld [vmem:[%s2045_s9] sm:$0xff] }
 0x32b   : > { %v1081_v25 = vrot.slane %v1071_v23, %v1080_v21  ;;  %v1088_v26 = vrot.slane %v1072_v24, %v1080_v21 }
 0x32d   : > { %v1103_v27 = vcombine.low %v1081_v25, %v1088_v26 }
 0x32f   : > { %v1111_v17 = vrot.slane %v1103_v27, %v1080_v21 }
 0x336   : > { %v914_v14 = vpop.f32.mrb[4].mxu0  ;;  %v985_v38 = vpop.f32.mrb[4].mxu1 }
 0x337   : > { %v915_v40 = vadd.f32 %v914_v14, %v685_v33  ;;  %v986_v41 = vadd.f32 %v985_v38, %v693_v35  ;;  %v916_v42 = vpop.f32.mrb[5].mxu0  ;;  %v987_v43 = vpop.f32.mrb[5].mxu1 }
 0x338   : > { %v917_v44 = vadd.f32 %v916_v42, %v689_v36  ;;  %v988_v45 = vadd.f32 %v987_v43, %v697_v37 }
 0x339   : > { %v994_v46 = vmax.f32 %v915_v40, 0.0  ;;  %v996_v47 = vmax.f32 %v986_v41, 0.0 }
 0x33a   : > { %v995_v3 = vmax.f32 %v917_v44, 0.0  ;;  %v997_v31 = vmax.f32 %v988_v45, 0.0 }
 0x33b   : > { %v1010_v48 = vsel %vm1003_vm4, %v994_v46, -inf  ;;  %v1012_v49 = vsel %vm1003_vm4, %v996_v47, -inf }
 0x33c   : > { %v1039_v50 = vrot.slane %v1010_v48, 4  ;;  %v1051_v34 = vrot.slane %v1012_v49, 4  ;;  %v1011_v51 = vsel %vm1003_vm4, %v995_v3, -inf  ;;  %v1013_v52 = vsel %vm1003_vm4, %v997_v31, -inf }
 0x33d   : > { %v1045_v53 = vrot.slane %v1011_v51, 4  ;;  %v1057_v54 = vrot.slane %v1013_v52, 4 }
 0x33e   : > { %v1040_v55 = vmax.f32 %v1010_v48, %v1039_v50  ;;  %v1052_v56 = vmax.f32 %v1012_v49, %v1051_v34 }
 0x33f   : > { %v1046_v57 = vmax.f32 %v1011_v51, %v1045_v53  ;;  %v1058_v58 = vmax.f32 %v1013_v52, %v1057_v54 }
 0x340   : > { %v1041_v59 = vrot.slane %v1040_v55, 2  ;;  %v1053_v60 = vrot.slane %v1052_v56, 2 }
 0x341   : > { %v1047_v61 = vrot.slane %v1046_v57, 2  ;;  %v1059_v62 = vrot.slane %v1058_v58, 2 }
 0x342   : > { %v1042_v63 = vmax.f32 %v1040_v55, %v1041_v59  ;;  %v1054_v0 = vmax.f32 %v1052_v56, %v1053_v60 }
 0x343   : > { %v1048_v1 = vmax.f32 %v1046_v57, %v1047_v61  ;;  %v1060_v2 = vmax.f32 %v1058_v58, %v1059_v62 }
 0x344   : > { %v1043_v4 = vrot.slane %v1042_v63, 1  ;;  %v1055_v5 = vrot.slane %v1054_v0, 1 }
 0x345   : > { %v1049_v39 = vrot.slane %v1048_v1, 1  ;;  %v1061_v6 = vrot.slane %v1060_v2, 1 }
 0x346   : > { %v1044_v7 = vmax.f32 %v1042_v63, %v1043_v4  ;;  %v1056_v8 = vmax.f32 %v1054_v0, %v1055_v5 }
 0x347   : > { %v1050_v9 = vmax.f32 %v1048_v1, %v1049_v39  ;;  %v1062_v10 = vmax.f32 %v1060_v2, %v1061_v6 }
 0x349   : > { %v1073_v11 = vcombine.low %v1044_v7, %v1050_v9  ;;  %v1074_v12 = vcombine.low %v1056_v8, %v1062_v10 }
 0x34b   : > { %v1095_v13 = vrot.slane %v1073_v11, %v1080_v21  ;;  %v1102_v15 = vrot.slane %v1074_v12, %v1080_v21 }
 0x34d   : > { %v1104_v16 = vcombine.low %v1095_v13, %v1102_v15 }
 0x34f   : > { %v1118_v18 = vrot.slane %v1104_v16, %v1080_v21 }
 0x351   : > { %v1119_v20 = vcombine.low %v1111_v17, %v1118_v18 }
 0x353   : > { %v1121_v22 = vmax.f32 %v1014_v19, %v1119_v20 }
 0x355   : > { %1122 = vst [vmem:[%s2045_s9] sm:$0xff] %v1121_v22 }
 0x356   : > { %1703 = shalt.err (!%p1700_p11)
}
 0x357   : > { %s1704_s16 = scalar_lea.hbm %s2137_s23, 128  ;;  %s1708_s30 = scalar_lea.hbm %s2200_s7, 256 }
 0x358   : > { %p1705_p12 = scmp.ne.s32.totalorder %s2137_s23, %s1704_s16  ;;  %p1709_p0 = scmp.lt.u32.totalorder %s2137_s23, %s2200_s7 }
 0x359   : > { %p1710_p2 = scmp.lt.u32.totalorder %s1708_s30, %s1704_s16  ;;  %p1712_p13 = scmp.lt.u32.totalorder %s1704_s16, %s2137_s23 }
 0x35a   : > { %p1706_p3 = pnand %p1705_p12, %p2223_p1 }
 0x35b   : > { %p1711_p10 = por %p1710_p2, %p1709_p0 }
 0x35c   : > { %p1707_p9 = pneg %p1706_p3 }
 0x35d   : > { %p1713_p4 = por %p1712_p13, %p1711_p10 }
 0x35f   : > { %p1714_p5 = pnand %p1713_p4, %p1707_p9 }
 0x361   : > { %1717 = shalt.err (!%p1714_p5)
}
 0x362   : > { %1475 = dma.vmem_to_hbm [thread:$0]  (%p2223_p1), %s2139_s20, 128, %s2137_s23, %s1124_s12  }
 0x363 PF: > { %p1502_p6 = scmp.ge.s32.totalorder %s1796_s8, 2  ;;  %s1150_s19 = sand.u32 1, %s1768_s24  }
 0x364   : > { %p2224_p7 = scmp.ne.s32.totalorder %s2215_s15, 0  ;;  %s1151_s21 = scalar_lea.sflag [#allocation4], %s1150_s19 }
 0x366   : > { %p1491_p8 = pnand %p1502_p6, %p2224_p7 }
 0x368   : > { %1763 = dma.done.wait (!%p1491_p8), %s1151_s21, 128  }
 0x369   : > { %1765 = vsyncadd (!%p1491_p8), %s1151_s21, 4294967168  ;;  %s23_s8 = sadd.s32 1, %s1796_s8   ;;  %s2225_s27 = sld [smem:[#allocation15_spill]] }
 0x36a   : > { %p20_p11 = scmp.ge.s32.totalorder %s23_s8, 8   ;;  %s2226_s26 = sld [smem:[#allocation20_spill]] }
 0x36b   : > { %s2227_s14 = sld [smem:[#allocation16_spill]]  ;;  %s2228_s28 = sld [smem:[#allocation17_spill]] }
 0x36c   : > { %s2229_s29 = sld [smem:[#allocation18_spill]]  ;;  %s2230_s30 = sld [smem:[#allocation19_spill]] }
 0x36d   : > { %s2231_s24 = smov %s1772_s25  ;;  %22 = sbr.rel (!%p20_p11) target bundleno = 8 (0x8), region = 104 }
 0x36f   : > { %s2232_s25 = smov %s2225_s27 }
 0x371   : > { %s2233_s27 = smov %s2227_s14 }
 0x374   :  { %1156 = vsyncpa [#allocation3], 1 }
 0x375   :  { %1158 = vsyncpa [#allocation3 + $0x1], 1 }
 0x376   :  { %1159 = vsyncpa [#allocation6], 1 }
 0x377   :  { %1160 = vsyncpa [#allocation9], 1 }
 0x378   :  { %1161 = vsyncpa [#allocation4], 1 }
 0x379   :  { %1163 = vsyncpa [#allocation4 + $0x1], 1 }

</bundles_post_ra>
